<compile_context>
chip_gen: v7x
topology: tpu7x:2x2x1
jax: 0.10.0
libtpu: 0.0.40
codegen_flags: <defaults>
</compile_context>

<pallas_src>
import functools

import jax
import jax.numpy as jnp
from jax.experimental import pallas as pl
from jax.experimental.pallas import tpu as pltpu

K_SURROGATE = 2.0   # only affects backward of the torch surrogate clamp; forward == clamp
EPS = 1e-3
LANE = 128


def _addnoise_kernel(x_ref, g_ref, u_ref, o_ref, *,
                     num_photons, inv_num_photons, bernoulli_p):
    # x_ref: (B, C, R, 128)  prediction tile
    # g_ref: (1, C, R, 128)  standard-normal noise tile (broadcast over batch)
    # u_ref: (B, 1, R, 128)  uniform [0,1) tile for the bernoulli mask (broadcast over channels)
    x = jnp.clip(x_ref[...], 0.0, 1.0)                  # differentiable_clamp forward
    if num_photons > 0:
        lam = x * num_photons
        y = (lam - 0.5 + jnp.sqrt(lam + EPS) * g_ref[...]) * inv_num_photons
    else:
        y = x
    y = jnp.where(u_ref[...] > bernoulli_p, y, 0.0)     # channel-broadcast dropout
    o_ref[...] = jnp.clip(y, 0.0, 1.0)                  # final differentiable_clamp forward


def _pick_rows(rows, batch, channels, max_rows_per_step):
    """Pick the per-step row-tile R (rows of 128 lanes), multiple of 8 unless full."""
    # Per-buffer bytes per row: x + out (B*C lanes each), gauss (C), unif (B), all f32.
    bytes_per_row = LANE * 4 * (2 * batch * channels + channels + batch)
    budget = 12 * 1024 * 1024            # per buffer; x2 double-buffering ~= 24 MiB working set
    cap = max(8, (budget // bytes_per_row) // 8 * 8)
    cap = min(cap, max(8, (max_rows_per_step // 8) * 8))
    return rows if rows <= cap else cap  # R == rows (full dim) is the small-tensor fast path


def add_noise_forward(x, gauss, unif, noise_amount, *, max_rows_per_step=4096):
    """x: (B, C, H, W) f32; gauss: (1, C, H, W); unif: (B, 1, H, W)."""
    num_photons, bernoulli_p = noise_amount
    B, C, H, W = x.shape
    assert gauss.shape == (1, C, H, W)
    assert unif.shape == (B, 1, H, W)
    HW = H * W
    rows = pl.cdiv(HW, LANE)
    HW_pad = rows * LANE

    x3 = x.reshape(B, C, HW)
    g3 = gauss.reshape(1, C, HW)
    u3 = unif.reshape(B, 1, HW)
    if HW_pad != HW:
        # TODO(synk): only non-128-multiple spatial sizes take this (copying) pad/slice
        # fallback; an in-kernel ragged last-lane mask would avoid the extra HBM traffic.
        pad = ((0, 0), (0, 0), (0, HW_pad - HW))
        x3 = jnp.pad(x3, pad)
        g3 = jnp.pad(g3, pad)
        u3 = jnp.pad(u3, pad)

    # Sublane/lane-dense 4D views: (.., rows, 128) -> dense (8,128) tiles / full vregs.
    x4 = x3.reshape(B, C, rows, LANE)
    g4 = g3.reshape(1, C, rows, LANE)
    u4 = u3.reshape(B, 1, rows, LANE)

    R = _pick_rows(rows, B, C, max_rows_per_step)
    n_tiles = pl.cdiv(rows, R)           # partial last block allowed (masked by Pallas)

    kernel = functools.partial(
        _addnoise_kernel,
        num_photons=float(num_photons),
        inv_num_photons=(1.0 / float(num_photons)) if num_photons > 0 else 1.0,
        bernoulli_p=float(bernoulli_p),
    )

    n_el = B * C * rows * LANE
    cost = pl.CostEstimate(
        flops=10 * n_el,
        transcendentals=n_el,                                   # sqrt per element
        bytes_accessed=4 * (2 * n_el + C * rows * LANE + B * rows * LANE),
    )

    out4 = pl.pallas_call(
        kernel,
        out_shape=jax.ShapeDtypeStruct((B, C, rows, LANE), x.dtype),
        grid_spec=pltpu.PrefetchScalarGridSpec(
            num_scalar_prefetch=0,
            grid=(n_tiles,),
            in_specs=[
                pl.BlockSpec((B, C, R, LANE), lambda j: (0, 0, j, 0)),  # x
                pl.BlockSpec((1, C, R, LANE), lambda j: (0, 0, j, 0)),  # gauss
                pl.BlockSpec((B, 1, R, LANE), lambda j: (0, 0, j, 0)),  # unif (mask)
            ],
            out_specs=pl.BlockSpec((B, C, R, LANE), lambda j: (0, 0, j, 0)),
        ),
        compiler_params=pltpu.CompilerParams(
            dimension_semantics=("parallel",),
            vmem_limit_bytes=32 * 1024 * 1024,
        ),
        cost_estimate=cost,
    )(x4, g4, u4)

    out = out4.reshape(B, C, HW_pad)
    if HW_pad != HW:
        out = out[:, :, :HW]
    return out.reshape(B, C, H, W)


def _reference(x, gauss, unif, noise_amount):
    num_photons, bernoulli_p = noise_amount
    x = jnp.clip(x, 0.0, 1.0)
    if num_photons > 0:
        lam = x * num_photons
        y = (lam - 0.5 + jnp.sqrt(lam + EPS) * gauss) / num_photons
    else:
        y = x
    mask = (unif > bernoulli_p).astype(y.dtype)
    y = y * mask
    return jnp.clip(y, 0.0, 1.0)


def _run_case(key, shape, noise_amount, **kw):
    B, C, H, W = shape
    kx, kg, ku = jax.random.split(key, 3)
    x = jax.random.uniform(kx, (B, C, H, W), dtype=jnp.float32, minval=-0.2, maxval=1.2)
    gauss = jax.random.normal(kg, (1, C, H, W), dtype=jnp.float32)
    unif = jax.random.uniform(ku, (B, 1, H, W), dtype=jnp.float32)

    out = jax.block_until_ready(add_noise_forward(x, gauss, unif, noise_amount, **kw))
    ref = _reference(x, gauss, unif, noise_amount)
    assert out.shape == (B, C, H, W)
    assert jnp.allclose(out, ref, atol=1e-6), f"mismatch vs. reference for shape {shape}"
    return out


if __name__ == "__main__":
    # Module config: noise_amount = (num_photons, bernoulli_p); C=3 matches torch.randn(1,3,H,W)
    noise_amount = (30.0, 0.1)
    key = jax.random.PRNGKey(0)
    k0, k1, k2, k3 = jax.random.split(key, 4)

    # small primary case: single dense block, one grid step (fast path)
    _run_case(k0, (2, 3, 16, 16), noise_amount)
    # streaming grid with evenly-dividing row tiles (rows=24, R=8 -> 3 steps)
    _run_case(k1, (2, 3, 64, 48), noise_amount, max_rows_per_step=8)
    # partial (masked) last block (rows=24, R=16 -> 2 steps, 2nd block half-valid)
    _run_case(k2, (2, 3, 64, 48), noise_amount, max_rows_per_step=16)
    # non-128-multiple spatial size (exercises the pad/slice fallback)
    _run_case(k3, (2, 3, 10, 10), noise_amount)

    # TODO(synk): the surrogate sigmoid gradient of _ClampWithSurrogateGradient only affects
    # backward; forward semantics (plain clamp) are fully reproduced here. A custom_vjp would
    # be needed if gradients through this op are ever required.
    print("KERNEL_OK")
</pallas_src>

<mosaic_0001>
module attributes {stable_mosaic.version = 11 : i64} {
  func.func @_addnoise_kernel(%arg0: i32, %arg1: memref<2x3x2x128xf32, #tpu.memory_space<vmem>>, %arg2: memref<1x3x2x128xf32, #tpu.memory_space<vmem>>, %arg3: memref<2x1x2x128xf32, #tpu.memory_space<vmem>>, %arg4: memref<2x3x2x128xf32, #tpu.memory_space<vmem>>) attributes {dimension_semantics = [#tpu.dimension_semantics<parallel>], iteration_bounds = array<i64: 1>, scalar_prefetch = 0 : i64, scratch_operands = 0 : i64, tpu.core_type = #tpu.core_type<tc>, window_params = [{transform_indices = @transform_0, window_bounds = array<i64: 2, 3, 2, 128>}, {transform_indices = @transform_1, window_bounds = array<i64: 1, 3, 2, 128>}, {transform_indices = @transform_2, window_bounds = array<i64: 2, 1, 2, 128>}, {transform_indices = @transform_3, window_bounds = array<i64: 2, 3, 2, 128>}]} {
    %c0 = arith.constant 0 : index
    %c0_0 = arith.constant 0 : index
    %c0_1 = arith.constant 0 : index
    %c0_2 = arith.constant 0 : index
    %0 = vector.load %arg1[%c0, %c0_0, %c0_1, %c0_2] : memref<2x3x2x128xf32, #tpu.memory_space<vmem>>, vector<2x3x2x128xf32>
    %cst = arith.constant 0.000000e+00 : f32
    %cst_3 = arith.constant 1.000000e+00 : f32
    %1 = vector.broadcast %cst : f32 to vector<2x3x2x128xf32>
    %2 = arith.maximumf %1, %0 : vector<2x3x2x128xf32>
    %3 = vector.broadcast %cst_3 : f32 to vector<2x3x2x128xf32>
    %4 = arith.minimumf %3, %2 : vector<2x3x2x128xf32>
    %cst_4 = arith.constant 3.000000e+01 : f32
    %5 = vector.broadcast %cst_4 : f32 to vector<2x3x2x128xf32>
    %6 = arith.mulf %4, %5 : vector<2x3x2x128xf32>
    %cst_5 = arith.constant 5.000000e-01 : f32
    %7 = vector.broadcast %cst_5 : f32 to vector<2x3x2x128xf32>
    %8 = arith.subf %6, %7 : vector<2x3x2x128xf32>
    %cst_6 = arith.constant 1.000000e-03 : f32
    %9 = vector.broadcast %cst_6 : f32 to vector<2x3x2x128xf32>
    %10 = arith.addf %6, %9 : vector<2x3x2x128xf32>
    %11 = math.sqrt %10 : vector<2x3x2x128xf32>
    %c0_7 = arith.constant 0 : index
    %c0_8 = arith.constant 0 : index
    %c0_9 = arith.constant 0 : index
    %c0_10 = arith.constant 0 : index
    %12 = vector.load %arg2[%c0_7, %c0_8, %c0_9, %c0_10] : memref<1x3x2x128xf32, #tpu.memory_space<vmem>>, vector<1x3x2x128xf32>
    %13 = vector.broadcast %12 : vector<1x3x2x128xf32> to vector<2x3x2x128xf32>
    %14 = arith.mulf %11, %13 : vector<2x3x2x128xf32>
    %15 = arith.addf %8, %14 : vector<2x3x2x128xf32>
    %cst_11 = arith.constant 0.0333333351 : f32
    %16 = vector.broadcast %cst_11 : f32 to vector<2x3x2x128xf32>
    %17 = arith.mulf %15, %16 : vector<2x3x2x128xf32>
    %c0_12 = arith.constant 0 : index
    %c0_13 = arith.constant 0 : index
    %c0_14 = arith.constant 0 : index
    %c0_15 = arith.constant 0 : index
    %18 = vector.load %arg3[%c0_12, %c0_13, %c0_14, %c0_15] : memref<2x1x2x128xf32, #tpu.memory_space<vmem>>, vector<2x1x2x128xf32>
    %cst_16 = arith.constant 1.000000e-01 : f32
    %19 = vector.broadcast %cst_16 : f32 to vector<2x1x2x128xf32>
    %20 = arith.cmpf ogt, %18, %19 : vector<2x1x2x128xf32>
    %cst_17 = arith.constant 0.000000e+00 : f32
    %21 = vector.shape_cast %20 : vector<2x1x2x128xi1> to vector<2x1x2x128xi1>
    %22 = vector.broadcast %21 : vector<2x1x2x128xi1> to vector<2x3x2x128xi1>
    %23 = vector.broadcast %cst_17 : f32 to vector<2x3x2x128xf32>
    %24 = arith.select %22, %17, %23 : vector<2x3x2x128xi1>, vector<2x3x2x128xf32>
    %cst_18 = arith.constant 0.000000e+00 : f32
    %cst_19 = arith.constant 1.000000e+00 : f32
    %25 = vector.broadcast %cst_18 : f32 to vector<2x3x2x128xf32>
    %26 = arith.maximumf %25, %24 : vector<2x3x2x128xf32>
    %27 = vector.broadcast %cst_19 : f32 to vector<2x3x2x128xf32>
    %28 = arith.minimumf %27, %26 : vector<2x3x2x128xf32>
    %c0_20 = arith.constant 0 : index
    %c0_21 = arith.constant 0 : index
    %c0_22 = arith.constant 0 : index
    %c0_23 = arith.constant 0 : index
    %29 = vector.load %arg4[%c0_20, %c0_21, %c0_22, %c0_23] : memref<2x3x2x128xf32, #tpu.memory_space<vmem>>, vector<2x3x2x128xf32>
    tpu.vector_store %arg4[%c0_20, %c0_21, %c0_22, %c0_23], %28 {strides = array<i32>} : memref<2x3x2x128xf32, #tpu.memory_space<vmem>>, vector<2x3x2x128xf32>,
    return
  }
  func.func @transform_0(%arg0: i32) -> (i32, i32, i32, i32) {
    %c0_i32 = arith.constant 0 : i32
    %c0_i32_0 = arith.constant 0 : i32
    %c0_i32_1 = arith.constant 0 : i32
    %c0_i32_2 = arith.constant 0 : i32
    return %c0_i32, %c0_i32_0, %arg0, %c0_i32_1 : i32, i32, i32, i32
  }
  func.func @transform_1(%arg0: i32) -> (i32, i32, i32, i32) {
    %c0_i32 = arith.constant 0 : i32
    %c0_i32_0 = arith.constant 0 : i32
    %c0_i32_1 = arith.constant 0 : i32
    %c0_i32_2 = arith.constant 0 : i32
    return %c0_i32, %c0_i32_0, %arg0, %c0_i32_1 : i32, i32, i32, i32
  }
  func.func @transform_2(%arg0: i32) -> (i32, i32, i32, i32) {
    %c0_i32 = arith.constant 0 : i32
    %c0_i32_0 = arith.constant 0 : i32
    %c0_i32_1 = arith.constant 0 : i32
    %c0_i32_2 = arith.constant 0 : i32
    return %c0_i32, %c0_i32_0, %arg0, %c0_i32_1 : i32, i32, i32, i32
  }
  func.func @transform_3(%arg0: i32) -> (i32, i32, i32, i32) {
    %c0_i32 = arith.constant 0 : i32
    %c0_i32_0 = arith.constant 0 : i32
    %c0_i32_1 = arith.constant 0 : i32
    %c0_i32_2 = arith.constant 0 : i32
    return %c0_i32, %c0_i32_0, %arg0, %c0_i32_1 : i32, i32, i32, i32
  }
}

</mosaic_0001>

<bundles_post_ra>
// kernel: tpu_custom_call.1
= control target key start
LH: loop header
LB: loop body
LE: loop exit
PB: predicated region body
PF: predicated region fallthrough
CT: control target
= control target key end

     0   :  { %8 = vsyncpa [#allocation3], 0  ;;  %s413_s0 = inlined_call_operand.hbm [shape: f32[2,3,2,128], index: 0, kind: input, shape index: {}]   ;;  %s414_s1 = inlined_call_operand.hbm [shape: f32[1,3,2,128], index: 1, kind: input, shape index: {}]   ;;  %s415_s2 = inlined_call_operand.vmem [shape: f32[2,1,2,128], index: 2, kind: input, shape index: {}]   ;;  %s416_s3 = inlined_call_operand.hbm [shape: f32[2,3,2,128], index: 3, kind: output, shape index: {}]  }
   0x1   :  { %9 = vsyncpa [#allocation6], 0 }
   0x2   :  { %10 = vsyncpa [#allocation4], 0  ;;  %s287_s12 = smov [#allocation2]   ;;  %s215_s16 = scalar_lea.hbm %s413_s0, 192 }
   0x3   :  { %s16_s13 = sshll.u32 %s287_s12, 4  ;;  %p216_p0 = scmp.ne.s32.totalorder %s413_s0, %s215_s16  ;;  %s17_s13 = int_to_ptr.vmem [resolvable:$true] %s16_s13 }
   0x4   :  { %p219_p1 = scmp.lt.u32.totalorder %s215_s16, %s413_s0 }
   0x6   :  { %p221_p2 = pnand %p219_p1, %p216_p0 }
   0x8   :  { %224 = shalt.err (!%p221_p2)
}
   0x9   :  { %s225_s21 = scalar_lea.vmem %s17_s13, 192  ;;  %p230_p4 = scmp.lt.s32.totalorder %s17_s13, %s17_s13 }
   0xa   :  { %p226_p3 = scmp.ne.s32.totalorder %s17_s13, %s225_s21  ;;  %p231_p5 = scmp.lt.s32.totalorder %s225_s21, %s225_s21 }
   0xc   :  { %p232_p6 = por %p231_p5, %p230_p4 }
   0xe   :  { %p233_p7 = pnand %p232_p6, %p226_p3 }
  0x10   :  { %236 = shalt.err (!%p233_p7)
}
  0x11   :  { %s288_s22 = smov 32   ;;  %s289_s23 = smov 2  }
  0x12   :  { %22 = dma.hbm_to_vmem [thread:$0]  %s413_s0, 192, %s17_s13, [#allocation3], %s288_s22, %s288_s22, %s289_s23  }
  0x13   :  { %s290_s26 = smov [#allocation5]   ;;  %s237_s30 = scalar_lea.hbm %s414_s1, 96 }
  0x14   :  { %s28_s27 = sshll.u32 %s290_s26, 4  ;;  %p238_p8 = scmp.ne.s32.totalorder %s414_s1, %s237_s30  ;;  %s29_s27 = int_to_ptr.vmem [resolvable:$true] %s28_s27 }
  0x15   :  { %p241_p9 = scmp.lt.u32.totalorder %s237_s30, %s414_s1 }
  0x17   :  { %p243_p10 = pnand %p241_p9, %p238_p8 }
  0x19   :  { %246 = shalt.err (!%p243_p10)
}
  0x1a   :  { %s247_s8 = scalar_lea.vmem %s29_s27, 96  ;;  %p252_p12 = scmp.lt.s32.totalorder %s29_s27, %s29_s27 }
  0x1b   :  { %p248_p11 = scmp.ne.s32.totalorder %s29_s27, %s247_s8  ;;  %p253_p13 = scmp.lt.s32.totalorder %s247_s8, %s247_s8 }
  0x1d   :  { %p254_p0 = por %p253_p13, %p252_p12 }
  0x1f   :  { %p255_p1 = pnand %p254_p0, %p248_p11 }
  0x21   :  { %258 = shalt.err (!%p255_p1)
}
  0x22   :  { %34 = dma.hbm_to_vmem [thread:$0]  %s414_s1, 96, %s29_s27, [#allocation6], %s288_s22, %s288_s22, %s289_s23  }
  0x23   :  { %281 = dma.done.wait [#allocation3], 192  }
  0x24   :  { %282 = vsyncadd [#allocation3], 4294967104 }
  0x25   :  { %283 = dma.done.wait [#allocation6], 96  }
  0x26   :  { %284 = vsyncadd [#allocation6], 4294967200  ;;  %v43_v0 = vld [vmem:[#allocation2] sm:$0x3]  ;;  %v44_v2 = vld [vmem:[#allocation2 + $0x2] sm:$0x3] }
  0x27   :  { %v49_v1 = vmax.f32 %v43_v0, 0.0  ;;  %v50_v3 = vmax.f32 %v44_v2, 0.0  ;;  %v45_v4 = vld [vmem:[#allocation2 + $0x4] sm:$0x3]  ;;  %v46_v7 = vld [vmem:[#allocation2 + $0x6] sm:$0x3] }
  0x28   :  { %v51_v6 = vmax.f32 %v45_v4, 0.0  ;;  %v52_v9 = vmax.f32 %v46_v7, 0.0  ;;  %v47_v10 = vld [vmem:[#allocation2 + $0x8] sm:$0x3]  ;;  %v48_v16 = vld [vmem:[#allocation2 + $0xa] sm:$0x3] }
  0x29   :  { %v55_v5 = vmin.f32 %v49_v1, 1.0  ;;  %v56_v8 = vmin.f32 %v50_v3, 1.0  ;;  %v53_v13 = vmax.f32 %v47_v10, 0.0  ;;  %v54_v22 = vmax.f32 %v48_v16, 0.0  ;;  %v349_v29 = vld [vmem:[%s415_s2] sm:$0x3] }
  0x2a   :  { %v57_v12 = vmin.f32 %v51_v6, 1.0  ;;  %v58_v15 = vmin.f32 %v52_v9, 1.0  ;;  %vm144_vm2 = vcmp.gt.f32.partialorder %v349_v29, 0.1  ;;  %v121_v36 = vld [vmem:[#allocation5] sm:$0x3] }
  0x2b   :  { %v61_v11 = vmul.f32 30.0, %v55_v5  ;;  %v62_v14 = vmul.f32 30.0, %v56_v8  ;;  %v59_v21 = vmin.f32 %v53_v13, 1.0  ;;  %v60_v26 = vmin.f32 %v54_v22, 1.0  ;;  %v360_v41 = vld [vmem:[%s415_s2 + $0x2] sm:$0x3] }
  0x2c   :  { %v63_v18 = vmul.f32 30.0, %v57_v12  ;;  %v64_v20 = vmul.f32 30.0, %v58_v15  ;;  %v122_v43 = vld [vmem:[#allocation5 + $0x2] sm:$0x3]  ;;  %vm145_vm8 = vcmp.gt.f32.partialorder %v360_v41, 0.1 }
  0x2d   :  { %v73_v17 = vadd.f32 0.001, %v61_v11  ;;  %v74_v19 = vadd.f32 0.001, %v62_v14  ;;  %v65_v25 = vmul.f32 30.0, %v59_v21  ;;  %v344_v28 = vmul.f32 30.0, %v60_v26 }
  0x2e   :  { %v75_v23 = vadd.f32 0.001, %v63_v18  ;;  %v76_v24 = vadd.f32 0.001, %v64_v20  ;;  %v192_v32 = vadd.f32 -0.5, %v61_v11  ;;  %v193_v38 = vadd.f32 -0.5, %v62_v14 }
  0x2f   :  { %203 = vrsqrt.f32 %v73_v17  ;;  %v342_v27 = vadd.f32 0.001, %v65_v25  ;;  %v353_v30 = vadd.f32 0.001, %v344_v28  ;;  %vm81_vm0 = vcmp.eq.f32.partialorder %v73_v17, inf  ;;  %s291_s2 = smov [#allocation7]  }
  0x30   :  { %205 = vrsqrt.f32 %v74_v19  ;;  %vm83_vm1 = vcmp.eq.f32.partialorder %v73_v17, 0.0  ;;  %v84_v33 = vand.u32 2147483648, %v73_v17  ;;  %vm88_vm3 = vcmp.eq.f32.partialorder %v74_v19, inf  ;;  %v123_v55 = vld [vmem:[#allocation5 + $0x4] sm:$0x3]  ;;  %s179_s13 = sshll.u32 %s291_s2, 4  ;;  %s180_s13 = int_to_ptr.vmem [resolvable:$true] %s179_s13 }
  0x31   :  { %207 = vrsqrt.f32 %v75_v23  ;;  %v91_v37 = vand.u32 2147483648, %v74_v19  ;;  %vm90_vm4 = vcmp.eq.f32.partialorder %v74_v19, 0.0  ;;  %v194_v40 = vadd.f32 -0.5, %v63_v18  ;;  %s259_s14 = scalar_lea.vmem %s180_s13, 192  ;;  %p264_p3 = scmp.lt.s32.totalorder %s180_s13, %s180_s13 }
  0x32   :  { %209 = vrsqrt.f32 %v76_v24  ;;  %vm95_vm5 = vcmp.eq.f32.partialorder %v75_v23, inf  ;;  %vm97_vm6 = vcmp.eq.f32.partialorder %v75_v23, 0.0  ;;  %v195_v44 = vadd.f32 -0.5, %v64_v20  ;;  %p260_p2 = scmp.ne.s32.totalorder %s180_s13, %s259_s14  ;;  %p265_p4 = scmp.lt.s32.totalorder %s259_s14, %s259_s14 }
  0x33   :  { %211 = vrsqrt.f32 %v342_v27  ;;  %v98_v48 = vand.u32 2147483648, %v75_v23  ;;  %vm102_vm7 = vcmp.eq.f32.partialorder %v76_v24, inf  ;;  %v105_v53 = vand.u32 2147483648, %v76_v24 }
  0x34   :  { %213 = vrsqrt.f32 %v353_v30  ;;  %vm104_vm9 = vcmp.eq.f32.partialorder %v76_v24, 0.0  ;;  %v196_v57 = vadd.f32 -0.5, %v65_v25  ;;  %vm109_vm10 = vcmp.eq.f32.partialorder %v342_v27, inf  ;;  %p266_p5 = por %p265_p4, %p264_p3 }
  0x35   :  { %vm111_vm11 = vcmp.eq.f32.partialorder %v342_v27, 0.0  ;;  %v112_v0 = vand.u32 2147483648, %v342_v27  ;;  %vm116_vm12 = vcmp.eq.f32.partialorder %v353_v30, inf  ;;  %vm118_vm13 = vcmp.eq.f32.partialorder %v353_v30, 0.0 }
  0x36   :  { %v119_v11 = vand.u32 2147483648, %v353_v30  ;;  %v197_v22 = vadd.f32 -0.5, %v344_v28  ;;  %p267_p6 = pnand %p266_p5, %p260_p2 }
  0x39   :  { %v204_v31 = vpop.eup %203 }
  0x3a   :  { %v206_v34 = vpop.eup %205  ;;  %v80_v35 = vmul.f32 %v204_v31, %v73_v17 }
  0x3b   :  { %v87_v39 = vmul.f32 %v206_v34, %v74_v19  ;;  %v208_v45 = vpop.eup %207 }
  0x3c   :  { %v82_v42 = vsel %vm81_vm0, %v73_v17, %v80_v35  ;;  %v210_v49 = vpop.eup %209  ;;  %v94_v52 = vmul.f32 %v208_v45, %v75_v23 }
  0x3d   :  { %v85_v46 = vsel %vm83_vm1, %v84_v33, %v82_v42  ;;  %v89_v47 = vsel %vm88_vm3, %v74_v19, %v87_v39  ;;  %v101_v56 = vmul.f32 %v210_v49, %v76_v24  ;;  %v212_v60 = vpop.eup %211 }
  0x3e   :  { %v124_v50 = vmul.f32 %v121_v36, %v85_v46  ;;  %v92_v51 = vsel %vm90_vm4, %v91_v37, %v89_v47  ;;  %v96_v59 = vsel %vm95_vm5, %v75_v23, %v94_v52  ;;  %v108_v4 = vmul.f32 %v212_v60, %v342_v27  ;;  %v214_v7 = vpop.eup %213 }
  0x3f   :  { %v125_v54 = vmul.f32 %v122_v43, %v92_v51  ;;  %v99_v62 = vsel %vm97_vm6, %v98_v48, %v96_v59  ;;  %v103_v63 = vsel %vm102_vm7, %v76_v24, %v101_v56  ;;  %v115_v19 = vmul.f32 %v214_v7, %v353_v30 }
  0x40   :  { %v130_v58 = vadd.f32 %v192_v32, %v124_v50  ;;  %v126_v2 = vmul.f32 %v123_v55, %v99_v62  ;;  %v106_v3 = vsel %vm104_vm9, %v105_v53, %v103_v63  ;;  %v110_v10 = vsel %vm109_vm10, %v342_v27, %v108_v4 }
  0x41   :  { %v131_v61 = vadd.f32 %v193_v38, %v125_v54  ;;  %v127_v6 = vmul.f32 %v121_v36, %v106_v3  ;;  %v113_v15 = vsel %vm111_vm11, %v112_v0, %v110_v10  ;;  %v117_v26 = vsel %vm116_vm12, %v353_v30, %v115_v19 }
  0x42   :  { %v136_v1 = vmul.f32 0.033333335, %v130_v58  ;;  %v132_v9 = vadd.f32 %v194_v40, %v126_v2  ;;  %v128_v18 = vmul.f32 %v122_v43, %v113_v15  ;;  %v120_v32 = vsel %vm118_vm13, %v119_v11, %v117_v26 }
  0x43   :  { %v137_v5 = vmul.f32 0.033333335, %v131_v61  ;;  %v133_v14 = vadd.f32 %v195_v44, %v127_v6  ;;  %v129_v34 = vmul.f32 %v123_v55, %v120_v32 }
  0x44   :  { %v150_v8 = vsel %vm144_vm2, %v136_v1, 0.0  ;;  %v138_v17 = vmul.f32 0.033333335, %v132_v9  ;;  %v134_v25 = vadd.f32 %v196_v57, %v128_v18 }
  0x45   :  { %v156_v12 = vmax.f32 %v150_v8, 0.0  ;;  %v151_v13 = vsel %vm144_vm2, %v137_v5, 0.0  ;;  %v139_v21 = vmul.f32 0.033333335, %v133_v14  ;;  %v135_v37 = vadd.f32 %v197_v22, %v129_v34 }
  0x46   :  { %v157_v16 = vmax.f32 %v151_v13, 0.0  ;;  %v152_v24 = vsel %vm144_vm2, %v138_v17, 0.0  ;;  %v140_v28 = vmul.f32 0.033333335, %v134_v25 }
  0x47   :  { %v162_v20 = vmin.f32 %v156_v12, 1.0  ;;  %v158_v27 = vmax.f32 %v152_v24, 0.0  ;;  %v153_v31 = vsel %vm145_vm8, %v139_v21, 0.0  ;;  %v141_v39 = vmul.f32 0.033333335, %v135_v37 }
  0x48   :  { %v163_v23 = vmin.f32 %v157_v16, 1.0  ;;  %v159_v33 = vmax.f32 %v153_v31, 0.0  ;;  %v154_v36 = vsel %vm145_vm8, %v140_v28, 0.0 }
  0x49   :  { %168 = vst [vmem:[#allocation7] sm:$0x3] %v162_v20  ;;  %v164_v35 = vmin.f32 %v158_v27, 1.0  ;;  %v160_v38 = vmax.f32 %v154_v36, 0.0  ;;  %v155_v42 = vsel %vm145_vm8, %v141_v39, 0.0 }
  0x4a   :  { %169 = vst [vmem:[#allocation7 + $0x2] sm:$0x3] %v163_v23  ;;  %v165_v29 = vmin.f32 %v159_v33, 1.0  ;;  %v161_v30 = vmax.f32 %v155_v42, 0.0 }
  0x4b   :  { %170 = vst [vmem:[#allocation7 + $0x4] sm:$0x3] %v164_v35  ;;  %v166_v40 = vmin.f32 %v160_v38, 1.0 }
  0x4c   :  { %171 = vst [vmem:[#allocation7 + $0x6] sm:$0x3] %v165_v29  ;;  %v167_v43 = vmin.f32 %v161_v30, 1.0 }
  0x4d   :  { %172 = vst [vmem:[#allocation7 + $0x8] sm:$0x3] %v166_v40 }
  0x4e   :  { %173 = vst [vmem:[#allocation7 + $0xa] sm:$0x3] %v167_v43 }
  0x4f   :  { %270 = shalt.err (!%p267_p6)
}
  0x50   :  { %s271_s17 = scalar_lea.hbm %s416_s3, 192 }
  0x51   :  { %p272_p7 = scmp.ne.s32.totalorder %s416_s3, %s271_s17  ;;  %p275_p8 = scmp.lt.u32.totalorder %s271_s17, %s416_s3 }
  0x53   :  { %p277_p9 = pnand %p275_p8, %p272_p7 }
  0x55   :  { %280 = shalt.err (!%p277_p9)
}
  0x56   :  { %185 = dma.vmem_to_hbm [thread:$0]  %s180_s13, 192, %s416_s3, [#allocation4], %s288_s22, %s288_s22, %s289_s23  }
  0x57   :  { %285 = dma.done.wait [#allocation4], 192  }
  0x58   :  { %286 = vsyncadd [#allocation4], 4294967104 }
  0x59   :  { %189 = vsyncpa [#allocation3], 1 }
  0x5a   :  { %190 = vsyncpa [#allocation6], 1 }
  0x5b   :  { %191 = vsyncpa [#allocation4], 1 }

</bundles_post_ra>
